<compile_context>
chip_gen: v7x
topology: tpu7x:2x2x1
jax: 0.10.0
libtpu: 0.0.40
codegen_flags: <defaults>
</compile_context>

<pallas_src>
import functools

import jax
import jax.numpy as jnp
import numpy as np
from jax.experimental import pallas as pl
from jax.experimental.pallas import tpu as pltpu

_BN_EPS = 1e-5
_DOT = dict(preferred_element_type=jnp.float32, precision=jax.lax.Precision.HIGHEST)


# --------------------------- parameter init (kernel layout) -------------------

def init_mlp_params(key, dims):
    """Per-MLP params in kernel layout: w (in,out), b/gamma/beta (1,out)."""
    params = []
    n_layers = len(dims) - 1
    for i in range(n_layers):
        key, k1, k2 = jax.random.split(key, 3)
        bound = 1.0 / np.sqrt(dims[i])
        layer = dict(
            w=jax.random.uniform(k1, (dims[i], dims[i + 1]), jnp.float32, -bound, bound),
            b=jax.random.uniform(k2, (1, dims[i + 1]), jnp.float32, -bound, bound),
        )
        if i < n_layers - 1:  # hidden layer -> ReLU + BatchNorm follow
            layer["gamma"] = jnp.ones((1, dims[i + 1]), jnp.float32)
            layer["beta"] = jnp.zeros((1, dims[i + 1]), jnp.float32)
        params.append(layer)
    return params


# ------------------ one-time host-side merge + pack into one slab -------------

def _round_up8(x):
    return (x + 7) // 8 * 8


def pack_params(params_tx, params_rx, N, M):
    """Merge tx/rx MLPs block-diagonally and pack everything into ONE f32 slab.

    Returns (slab, layout, d_row):
      layout = static tuple of (w_row, vec_row, d_in, d_out) per merged layer,
      d_row  = row offset of the constant (4N, 4N) column de-interleave matrix.
    The merged final layer's outputs are permuted to [tx angles | rx angles | tx w]
    so the kernel can run a single sigmoid/cos/sin pass on a contiguous block.
    """
    assert len(params_tx) == len(params_rx), "block-diag merge needs equal MLP depth"
    n_layers = len(params_tx)

    merged = []
    for i in range(n_layers):
        wt = np.asarray(params_tx[i]["w"], np.float32)
        wr = np.asarray(params_rx[i]["w"], np.float32)
        w = np.zeros((wt.shape[0] + wr.shape[0], wt.shape[1] + wr.shape[1]), np.float32)
        w[: wt.shape[0], : wt.shape[1]] = wt
        w[wt.shape[0]:, wt.shape[1]:] = wr
        b = np.concatenate([np.asarray(params_tx[i]["b"], np.float32),
                            np.asarray(params_rx[i]["b"], np.float32)], axis=1)
        layer = dict(w=w, b=b)
        if i < n_layers - 1:
            layer["gamma"] = np.concatenate(
                [np.asarray(params_tx[i]["gamma"], np.float32),
                 np.asarray(params_rx[i]["gamma"], np.float32)], axis=1)
            layer["beta"] = np.concatenate(
                [np.asarray(params_tx[i]["beta"], np.float32),
                 np.asarray(params_rx[i]["beta"], np.float32)], axis=1)
        merged.append(layer)

    # Permute merged final outputs: [tx angles (N) | rx angles (M) | tx beamformer (2N)]
    d_tx_out = np.asarray(params_tx[-1]["w"]).shape[1]          # 3N
    d_rx_out = np.asarray(params_rx[-1]["w"]).shape[1]          # M
    assert d_tx_out == 3 * N and d_rx_out == M
    perm = list(range(N)) + list(range(d_tx_out, d_tx_out + M)) + list(range(N, d_tx_out))
    merged[-1]["w"] = merged[-1]["w"][:, perm]
    merged[-1]["b"] = merged[-1]["b"][:, perm]

    # Constant de-interleave matrix: source col 4j+t -> dest col t*N+j, giving
    # contiguous blocks [Re(even cols) | Im(even) | Re(odd) | Im(odd)], width N each.
    D = np.zeros((4 * N, 4 * N), np.float32)
    for j in range(N):
        for t in range(4):
            D[4 * j + t, t * N + j] = 1.0

    width = max(max(l["w"].shape[1] for l in merged), 4 * N)
    layout = []
    row = 0
    for l in merged:
        d_in, d_out = l["w"].shape
        w_row = row
        row += _round_up8(d_in)
        vec_row = row                       # rows: [b; gamma; beta; pad...] (8-aligned)
        row += 8
        layout.append((w_row, vec_row, d_in, d_out))
    d_row = row
    row += _round_up8(4 * N)

    slab = np.zeros((_round_up8(row), width), np.float32)
    for (w_row, vec_row, d_in, d_out), l in zip(layout, merged):
        slab[w_row:w_row + d_in, :d_out] = l["w"]
        slab[vec_row, :d_out] = l["b"][0]
        if "gamma" in l:
            slab[vec_row + 1, :d_out] = l["gamma"][0]
            slab[vec_row + 2, :d_out] = l["beta"][0]
    slab[d_row:d_row + 4 * N, :4 * N] = D
    return jnp.asarray(slab), tuple(layout), d_row


# ------------------------------ fused kernel ---------------------------------

def _make_fused_kernel(layout, d_row, N, M, B):
    n_layers = len(layout)
    inv_b = 1.0 / B
    two_m = 2 * M

    def kernel(y_ref, p_ref, h_ref, out_ref):
        # ---- merged block-diagonal MLP (tx || rx share every pass) ------------
        h = y_ref[...]
        for i, (w_row, vec_row, d_in, d_out) in enumerate(layout):
            w = p_ref[w_row:w_row + d_in, 0:d_out]
            b = p_ref[vec_row:vec_row + 1, 0:d_out]
            z = jnp.dot(h, w, **_DOT) + b
            if i < n_layers - 1:
                a = jnp.maximum(z, 0.0)
                # single-pass BN batch statistics (biased var, torch training mode)
                s1 = jnp.sum(a, axis=0, keepdims=True)
                s2 = jnp.sum(a * a, axis=0, keepdims=True)
                mean = s1 * inv_b
                var = s2 * inv_b - mean * mean
                gamma = p_ref[vec_row + 1:vec_row + 2, 0:d_out]
                beta = p_ref[vec_row + 2:vec_row + 3, 0:d_out]
                scale = gamma * jax.lax.rsqrt(var + _BN_EPS)
                h = a * scale + (beta - mean * scale)
            else:
                h = z
        out = h                                # (B, N+M+2N) = [tx ang | rx ang | w]

        # ---- single sigmoid / cos / sin pass over ALL angles -------------------
        n_ang = N + M
        theta = (0.5 * jnp.pi) * (jnp.tanh(0.5 * out[:, 0:n_ang]) + 1.0)  # pi*sigmoid
        c = jnp.cos(theta)
        s = jnp.sin(theta)
        cos_t, sin_t = c[:, 0:N], s[:, 0:N]
        cos_r, sin_r = c[:, N:n_ang], s[:, N:n_ang]

        wv = out[:, n_ang:n_ang + 2 * N]
        wn = wv * jax.lax.rsqrt(jnp.sum(wv * wv, axis=1, keepdims=True))
        w_re, w_im = wn[:, 0:N], wn[:, N:2 * N]

        # ---- rx contraction: one MXU matmul, batch collapsed into sublanes -----
        # h_ref is (B*2M, 4N) real with Re/Im interleaved along lanes.  G is the
        # batch-block-diagonal row matrix built from [cos_r | sin_r].
        pol_r = jnp.concatenate([cos_r, sin_r], axis=1)                   # (B, 2M)
        g = jnp.concatenate([pol_r] * B, axis=1)                          # (B, B*2M)
        row_id = jax.lax.broadcasted_iota(jnp.int32, (B, B * two_m), 0)
        col_id = jax.lax.broadcasted_iota(jnp.int32, (B, B * two_m), 1)
        lo = row_id * two_m
        g = jnp.where((col_id >= lo) & (col_id < lo + two_m), g, 0.0)
        u = jnp.dot(g, h_ref[...], **_DOT)                                # (B, 4N)

        # ---- de-interleave via constant permutation matmul (from params slab) --
        d_mat = p_ref[d_row:d_row + 4 * N, 0:4 * N]
        up = jnp.dot(u, d_mat, **_DOT)     # [Re(even) | Im(even) | Re(odd) | Im(odd)]
        re_e, im_e = up[:, 0:N], up[:, N:2 * N]
        re_o, im_o = up[:, 2 * N:3 * N], up[:, 3 * N:4 * N]

        heff_re = re_e * cos_t + re_o * sin_t
        heff_im = im_e * cos_t + im_o * sin_t

        y_re = jnp.sum(heff_re * w_re - heff_im * w_im, axis=1, keepdims=True)
        y_im = jnp.sum(heff_re * w_im + heff_im * w_re, axis=1, keepdims=True)
        out_ref[...] = jnp.concatenate([y_re, y_im], axis=1)              # single store

    return kernel


# --------------------------- pallas_call wrapper ------------------------------

@functools.partial(jax.jit, static_argnames=("N", "layout", "d_row"))
def beamforming_forward_pallas(slab, H, y_tx, y_rx, *, N, layout, d_row):
    """Pallas equivalent of BeamformingModel.forward(H, N, y_tx, y_rx)."""
    B = y_tx.shape[0]
    M = H.shape[1] // 2

    # Single merged MLP input; H shipped as a raw f32 view (Re/Im interleaved
    # along the last axis, batch collapsed into sublanes): one tiny producer
    # fusion instead of the old strided-slice/concat packing chain.
    y_in = jnp.concatenate([y_tx, y_rx], axis=1)
    h_f = jnp.stack([jnp.real(H), jnp.imag(H)], axis=-1)
    h_f = h_f.reshape(B * 2 * M, 4 * N).astype(jnp.float32)

    kernel = _make_fused_kernel(layout, d_row, N, M, B)
    vmem = pl.BlockSpec(memory_space=pltpu.MemorySpace.VMEM)
    y2 = pl.pallas_call(
        kernel,
        out_shape=jax.ShapeDtypeStruct((B, 2), jnp.float32),
        in_specs=[vmem, vmem, vmem],
        out_specs=vmem,
    )(y_in, slab, h_f)

    # matches torch output: (B, 1, 1) complex64
    return jax.lax.complex(y2[:, 0], y2[:, 1]).reshape(B, 1, 1)


# -------------------- float64 numpy reference (torch-faithful) ----------------

def _torch_reference_numpy(params_tx, params_rx, H, N, y_tx, y_rx):
    def f64(a):
        return np.asarray(a, dtype=np.float64)

    def mlp(params, x):
        h = f64(x)
        for layer in params[:-1]:
            z = h @ f64(layer["w"]) + f64(layer["b"])
            a = np.maximum(z, 0.0)
            mean = a.mean(axis=0, keepdims=True)
            var = ((a - mean) ** 2).mean(axis=0, keepdims=True)
            h = f64(layer["gamma"]) * (a - mean) / np.sqrt(var + _BN_EPS) + f64(layer["beta"])
        return h @ f64(params[-1]["w"]) + f64(params[-1]["b"])

    Hc = np.asarray(H).astype(np.complex128)
    B = Hc.shape[0]

    out_tx = mlp(params_tx, y_tx)
    angle_t = 1.0 / (1.0 + np.exp(-out_tx[:, :N])) * np.pi
    cos_t, sin_t = np.cos(angle_t), np.sin(angle_t)
    P_A = np.zeros((B, 2 * N, N), dtype=np.complex128)           # vec2block_diag(Pol_A_t)
    for b in range(B):
        for j in range(N):
            P_A[b, 2 * j, j] = cos_t[b, j]
            P_A[b, 2 * j + 1, j] = sin_t[b, j]

    w = out_tx[:, N:]
    w = w / np.linalg.norm(w, axis=1, keepdims=True)
    W = (w[:, :N] + 1j * w[:, N:])[:, :, None]

    out_rx = mlp(params_rx, y_rx)
    angle_r = 1.0 / (1.0 + np.exp(-out_rx)) * np.pi
    # Pol_B_r is hstacked as 2-D -> vec2block_diag degenerates to a (2M,1) column;
    # its transpose is the row [cos_r | sin_r].
    P_B_T = np.concatenate([np.cos(angle_r), np.sin(angle_r)], axis=1)[:, None, :]
    P_B_T = P_B_T.astype(np.complex128)

    Heff = P_B_T @ Hc @ P_A
    return Heff @ W                                              # (B, 1, 1)


# ----------------------------------- main --------------------------------------

if __name__ == "__main__":
    B, N, M = 2, 4, 4                 # batch, tx antennas, rx antennas
    in_tx, in_rx, hid = 32, 32, 32
    MLP_tx_dim = [in_tx, hid, 3 * N]  # N angles + 2N beamformer reals
    MLP_rx_dim = [in_rx, hid, M]      # M rx angles

    key = jax.random.PRNGKey(0)
    k_tx, k_rx, kh1, kh2, k_ytx, k_yrx = jax.random.split(key, 6)
    params_tx = init_mlp_params(k_tx, MLP_tx_dim)
    params_rx = init_mlp_params(k_rx, MLP_rx_dim)
    slab, layout, d_row = pack_params(params_tx, params_rx, N, M)

    H = (jax.random.normal(kh1, (B, 2 * M, 2 * N), jnp.float32)
         + 1j * jax.random.normal(kh2, (B, 2 * M, 2 * N), jnp.float32)).astype(jnp.complex64)
    y_tx = jax.random.normal(k_ytx, (B, in_tx), jnp.float32)
    y_rx = jax.random.normal(k_yrx, (B, in_rx), jnp.float32)

    y = beamforming_forward_pallas(slab, H, y_tx, y_rx, N=N, layout=layout, d_row=d_row)
    y = jax.block_until_ready(y)

    # Reference is exact float64 (two-pass BN var).  Kernel matmuls now use
    # precision=HIGHEST, so the remaining error budget is dominated by the
    # single-pass (E[x^2]-mean^2) BatchNorm variance at B=2, not MXU rounding:
    # tolerance tightened 10x vs the previous 5e-2.
    y_ref = _torch_reference_numpy(params_tx, params_rx, H, N, y_tx, y_rx)
    np.testing.assert_allclose(np.asarray(y), y_ref, rtol=5e-3, atol=5e-3)

    print("KERNEL_OK")
</pallas_src>

<mosaic_0001>
module attributes {stable_mosaic.version = 11 : i64} {
  func.func @kernel(%arg0: memref<2x64xf32, #tpu.memory_space<vmem>>, %arg1: memref<160x64xf32, #tpu.memory_space<vmem>>, %arg2: memref<16x16xf32, #tpu.memory_space<vmem>>, %arg3: memref<2x2xf32, #tpu.memory_space<vmem>>) attributes {dimension_semantics = [], scalar_prefetch = 0 : i64, scratch_operands = 0 : i64, tpu.core_type = #tpu.core_type<tc>} {
    %c0 = arith.constant 0 : index
    %c0_0 = arith.constant 0 : index
    %0 = vector.load %arg0[%c0, %c0_0] : memref<2x64xf32, #tpu.memory_space<vmem>>, vector<2x64xf32>
    %c0_1 = arith.constant 0 : index
    %c0_2 = arith.constant 0 : index
    %1 = vector.load %arg1[%c0_1, %c0_2] : memref<160x64xf32, #tpu.memory_space<vmem>>, vector<64x64xf32>
    %c64 = arith.constant 64 : index
    %c0_3 = arith.constant 0 : index
    %2 = vector.load %arg1[%c64, %c0_3] : memref<160x64xf32, #tpu.memory_space<vmem>>, vector<1x64xf32>
    %cst = arith.constant dense<0.000000e+00> : vector<2x64xf32>
    %3 = tpu.matmul %0, %1, %cst {dimension_numbers = #tpu.dot_dimension_numbers<[1], [0], [0], [1], [0, 0, 1, 1], [], []>, precision = #tpu.contract_precision<fp32>} : vector<2x64xf32>, vector<64x64xf32>, vector<2x64xf32> -> vector<2x64xf32>
    %4 = vector.broadcast %2 : vector<1x64xf32> to vector<2x64xf32>
    %5 = arith.addf %3, %4 : vector<2x64xf32>
    %cst_4 = arith.constant 0.000000e+00 : f32
    %6 = vector.broadcast %cst_4 : f32 to vector<2x64xf32>
    %7 = arith.maximumf %5, %6 : vector<2x64xf32>
    %cst_5 = arith.constant dense<0.000000e+00> : vector<64xf32>
    %8 = vector.multi_reduction <add>, %7, %cst_5 [0] : vector<2x64xf32> to vector<64xf32>
    %9 = vector.shape_cast %8 : vector<64xf32> to vector<1x64xf32>
    %10 = arith.mulf %7, %7 : vector<2x64xf32>
    %cst_6 = arith.constant dense<0.000000e+00> : vector<64xf32>
    %11 = vector.multi_reduction <add>, %10, %cst_6 [0] : vector<2x64xf32> to vector<64xf32>
    %12 = vector.shape_cast %11 : vector<64xf32> to vector<1x64xf32>
    %cst_7 = arith.constant 5.000000e-01 : f32
    %13 = vector.broadcast %cst_7 : f32 to vector<1x64xf32>
    %14 = arith.mulf %9, %13 : vector<1x64xf32>
    %cst_8 = arith.constant 5.000000e-01 : f32
    %15 = vector.broadcast %cst_8 : f32 to vector<1x64xf32>
    %16 = arith.mulf %12, %15 : vector<1x64xf32>
    %17 = arith.mulf %14, %14 : vector<1x64xf32>
    %18 = arith.subf %16, %17 : vector<1x64xf32>
    %c65 = arith.constant 65 : index
    %c0_9 = arith.constant 0 : index
    %19 = vector.load %arg1[%c65, %c0_9] : memref<160x64xf32, #tpu.memory_space<vmem>>, vector<1x64xf32>
    %c66 = arith.constant 66 : index
    %c0_10 = arith.constant 0 : index
    %20 = vector.load %arg1[%c66, %c0_10] : memref<160x64xf32, #tpu.memory_space<vmem>>, vector<1x64xf32>
    %cst_11 = arith.constant 9.99999974E-6 : f32
    %21 = vector.broadcast %cst_11 : f32 to vector<1x64xf32>
    %22 = arith.addf %18, %21 : vector<1x64xf32>
    %23 = math.rsqrt %22 : vector<1x64xf32>
    %24 = arith.mulf %19, %23 : vector<1x64xf32>
    %25 = vector.broadcast %24 : vector<1x64xf32> to vector<2x64xf32>
    %26 = arith.mulf %7, %25 : vector<2x64xf32>
    %27 = arith.mulf %14, %24 : vector<1x64xf32>
    %28 = arith.subf %20, %27 : vector<1x64xf32>
    %29 = vector.broadcast %28 : vector<1x64xf32> to vector<2x64xf32>
    %30 = arith.addf %26, %29 : vector<2x64xf32>
    %c72 = arith.constant 72 : index
    %c0_12 = arith.constant 0 : index
    %31 = vector.load %arg1[%c72, %c0_12] : memref<160x64xf32, #tpu.memory_space<vmem>>, vector<64x16xf32>
    %c136 = arith.constant 136 : index
    %c0_13 = arith.constant 0 : index
    %32 = vector.load %arg1[%c136, %c0_13] : memref<160x64xf32, #tpu.memory_space<vmem>>, vector<1x16xf32>
    %cst_14 = arith.constant dense<0.000000e+00> : vector<2x16xf32>
    %33 = tpu.matmul %30, %31, %cst_14 {dimension_numbers = #tpu.dot_dimension_numbers<[1], [0], [0], [1], [0, 0, 1, 1], [], []>, precision = #tpu.contract_precision<fp32>} : vector<2x64xf32>, vector<64x16xf32>, vector<2x16xf32> -> vector<2x16xf32>
    %34 = vector.broadcast %32 : vector<1x16xf32> to vector<2x16xf32>
    %35 = arith.addf %33, %34 : vector<2x16xf32>
    %36 = vector.extract_strided_slice %35 {offsets = [0, 0], sizes = [2, 8], strides = [1, 1]} : vector<2x16xf32> to vector<2x8xf32>
    %cst_15 = arith.constant 5.000000e-01 : f32
    %37 = vector.broadcast %cst_15 : f32 to vector<2x8xf32>
    %38 = arith.mulf %37, %36 : vector<2x8xf32>
    %39 = math.tanh %38 : vector<2x8xf32>
    %cst_16 = arith.constant 1.000000e+00 : f32
    %40 = vector.broadcast %cst_16 : f32 to vector<2x8xf32>
    %41 = arith.addf %39, %40 : vector<2x8xf32>
    %cst_17 = arith.constant 1.57079637 : f32
    %42 = vector.broadcast %cst_17 : f32 to vector<2x8xf32>
    %43 = arith.mulf %42, %41 : vector<2x8xf32>
    %44 = math.cos %43 : vector<2x8xf32>
    %45 = math.sin %43 : vector<2x8xf32>
    %46 = vector.extract_strided_slice %44 {offsets = [0, 0], sizes = [2, 4], strides = [1, 1]} : vector<2x8xf32> to vector<2x4xf32>
    %47 = vector.extract_strided_slice %45 {offsets = [0, 0], sizes = [2, 4], strides = [1, 1]} : vector<2x8xf32> to vector<2x4xf32>
    %48 = vector.extract_strided_slice %44 {offsets = [0, 4], sizes = [2, 4], strides = [1, 1]} : vector<2x8xf32> to vector<2x4xf32>
    %49 = vector.extract_strided_slice %45 {offsets = [0, 4], sizes = [2, 4], strides = [1, 1]} : vector<2x8xf32> to vector<2x4xf32>
    %50 = vector.extract_strided_slice %35 {offsets = [0, 8], sizes = [2, 8], strides = [1, 1]} : vector<2x16xf32> to vector<2x8xf32>
    %51 = arith.mulf %50, %50 : vector<2x8xf32>
    %cst_18 = arith.constant dense<0.000000e+00> : vector<2xf32>
    %52 = vector.multi_reduction <add>, %51, %cst_18 [1] : vector<2x8xf32> to vector<2xf32>
    %53 = vector.shape_cast %52 : vector<2xf32> to vector<2x1xf32>
    %54 = math.rsqrt %53 : vector<2x1xf32>
    %55 = vector.broadcast %54 : vector<2x1xf32> to vector<2x8xf32>
    %56 = arith.mulf %50, %55 : vector<2x8xf32>
    %57 = vector.extract_strided_slice %56 {offsets = [0, 0], sizes = [2, 4], strides = [1, 1]} : vector<2x8xf32> to vector<2x4xf32>
    %58 = vector.extract_strided_slice %56 {offsets = [0, 4], sizes = [2, 4], strides = [1, 1]} : vector<2x8xf32> to vector<2x4xf32>
    %59 = tpu.concatenate %48, %49 in 1 : vector<2x4xf32>, vector<2x4xf32> -> vector<2x8xf32>
    %60 = tpu.concatenate %59, %59 in 1 : vector<2x8xf32>, vector<2x8xf32> -> vector<2x16xf32>
    %61 = tpu.iota {dimensions = array<i32: 0>} : vector<2x16xi32>
    %62 = tpu.iota {dimensions = array<i32: 1>} : vector<2x16xi32>
    %c8_i32 = arith.constant 8 : i32
    %63 = vector.broadcast %c8_i32 : i32 to vector<2x16xi32>
    %64 = arith.muli %61, %63 : vector<2x16xi32>
    %65 = arith.cmpi sge, %62, %64 : vector<2x16xi32>
    %c8_i32_19 = arith.constant 8 : i32
    %66 = vector.broadcast %c8_i32_19 : i32 to vector<2x16xi32>
    %67 = arith.addi %64, %66 : vector<2x16xi32>
    %68 = arith.cmpi slt, %62, %67 : vector<2x16xi32>
    %69 = arith.andi %65, %68 : vector<2x16xi1>
    %cst_20 = arith.constant 0.000000e+00 : f32
    %70 = vector.broadcast %cst_20 : f32 to vector<2x16xf32>
    %71 = arith.select %69, %60, %70 : vector<2x16xi1>, vector<2x16xf32>
    %c0_21 = arith.constant 0 : index
    %c0_22 = arith.constant 0 : index
    %72 = vector.load %arg2[%c0_21, %c0_22] : memref<16x16xf32, #tpu.memory_space<vmem>>, vector<16x16xf32>
    %cst_23 = arith.constant dense<0.000000e+00> : vector<2x16xf32>
    %73 = tpu.matmul %71, %72, %cst_23 {dimension_numbers = #tpu.dot_dimension_numbers<[1], [0], [0], [1], [0, 0, 1, 1], [], []>, precision = #tpu.contract_precision<fp32>} : vector<2x16xf32>, vector<16x16xf32>, vector<2x16xf32> -> vector<2x16xf32>
    %c144 = arith.constant 144 : index
    %c0_24 = arith.constant 0 : index
    %74 = vector.load %arg1[%c144, %c0_24] : memref<160x64xf32, #tpu.memory_space<vmem>>, vector<16x16xf32>
    %cst_25 = arith.constant dense<0.000000e+00> : vector<2x16xf32>
    %75 = tpu.matmul %73, %74, %cst_25 {dimension_numbers = #tpu.dot_dimension_numbers<[1], [0], [0], [1], [0, 0, 1, 1], [], []>, precision = #tpu.contract_precision<fp32>} : vector<2x16xf32>, vector<16x16xf32>, vector<2x16xf32> -> vector<2x16xf32>
    %76 = vector.extract_strided_slice %75 {offsets = [0, 0], sizes = [2, 4], strides = [1, 1]} : vector<2x16xf32> to vector<2x4xf32>
    %77 = vector.extract_strided_slice %75 {offsets = [0, 4], sizes = [2, 4], strides = [1, 1]} : vector<2x16xf32> to vector<2x4xf32>
    %78 = vector.extract_strided_slice %75 {offsets = [0, 8], sizes = [2, 4], strides = [1, 1]} : vector<2x16xf32> to vector<2x4xf32>
    %79 = vector.extract_strided_slice %75 {offsets = [0, 12], sizes = [2, 4], strides = [1, 1]} : vector<2x16xf32> to vector<2x4xf32>
    %80 = arith.mulf %76, %46 : vector<2x4xf32>
    %81 = arith.mulf %78, %47 : vector<2x4xf32>
    %82 = arith.addf %80, %81 : vector<2x4xf32>
    %83 = arith.mulf %77, %46 : vector<2x4xf32>
    %84 = arith.mulf %79, %47 : vector<2x4xf32>
    %85 = arith.addf %83, %84 : vector<2x4xf32>
    %86 = arith.mulf %82, %57 : vector<2x4xf32>
    %87 = arith.mulf %85, %58 : vector<2x4xf32>
    %88 = arith.subf %86, %87 : vector<2x4xf32>
    %cst_26 = arith.constant dense<0.000000e+00> : vector<2xf32>
    %89 = vector.multi_reduction <add>, %88, %cst_26 [1] : vector<2x4xf32> to vector<2xf32>
    %90 = vector.shape_cast %89 : vector<2xf32> to vector<2x1xf32>
    %91 = arith.mulf %82, %58 : vector<2x4xf32>
    %92 = arith.mulf %85, %57 : vector<2x4xf32>
    %93 = arith.addf %91, %92 : vector<2x4xf32>
    %cst_27 = arith.constant dense<0.000000e+00> : vector<2xf32>
    %94 = vector.multi_reduction <add>, %93, %cst_27 [1] : vector<2x4xf32> to vector<2xf32>
    %95 = vector.shape_cast %94 : vector<2xf32> to vector<2x1xf32>
    %96 = tpu.concatenate %90, %95 in 1 : vector<2x1xf32>, vector<2x1xf32> -> vector<2x2xf32>
    %c0_28 = arith.constant 0 : index
    %c0_29 = arith.constant 0 : index
    %97 = vector.load %arg3[%c0_28, %c0_29] : memref<2x2xf32, #tpu.memory_space<vmem>>, vector<2x2xf32>
    tpu.vector_store %arg3[%c0_28, %c0_29], %96 {strides = array<i32>} : memref<2x2xf32, #tpu.memory_space<vmem>>, vector<2x2xf32>,
    return
  }
}

</mosaic_0001>

<bundles_post_ra>
// kernel: custom-call
= control target key start
LH: loop header
LB: loop body
LE: loop exit
PB: predicated region body
PF: predicated region fallthrough
CT: control target
= control target key end

     0   :  { %2 = vsyncpa [#allocation0], 0  ;;  %s61_s0 = inlined_call_operand.hbm [shape: c64[2,8,8], index: 0, kind: input, shape index: {}]   ;;  %s62_s1 = inlined_call_operand.vmem [shape: f32[2,8,8], index: 1, kind: output, shape index: {}]  }
   0x1   :  { %s3_s8 = sshll.u32 %s62_s1, 4  ;;  %s9_s11 = scalar_lea.hbm %s61_s0, 256  ;;  %s4_s8 = int_to_ptr.vmem [resolvable:$true] %s3_s8 }
   0x2   :  { %p10_p0 = scmp.ne.s32.totalorder %s61_s0, %s9_s11  ;;  %s11_s16 = scalar_lea.hbm %s61_s0, 512 }
   0x3   :  { %p12_p1 = scmp.lt.u32.totalorder %s11_s16, %s9_s11  ;;  %p13_p2 = scmp.lt.u32.totalorder %s9_s11, %s61_s0 }
   0x5   :  { %p14_p3 = por %p13_p2, %p12_p1 }
   0x7   :  { %p15_p4 = pnand %p14_p3, %p10_p0 }
   0x9   :  { %18 = shalt.err (!%p15_p4)  }
   0xa   :  { %s19_s1 = scalar_lea.vmem %s4_s8, 256  ;;  %p24_p6 = scmp.lt.s32.totalorder %s4_s8, %s4_s8 }
   0xb   :  { %p20_p5 = scmp.ne.s32.totalorder %s4_s8, %s19_s1  ;;  %p25_p7 = scmp.lt.s32.totalorder %s19_s1, %s19_s1 }
   0xd   :  { %p26_p8 = por %p25_p7, %p24_p6 }
   0xf   :  { %p27_p9 = pnand %p26_p8, %p20_p5 }
  0x11   :  { %30 = shalt.err (!%p27_p9)  }
  0x12   :  { %6 = dma.hbm_to_vmem [thread:$0]  %s61_s0, 256, %s4_s8, [#allocation0] }
  0x13   :  { %31 = dma.done.wait [#allocation0], 256  }
  0x14   :  { %32 = vsyncadd [#allocation0], 4294967040 }
  0x15   :  { %8 = vsyncpa [#allocation0], 1 }

// kernel: custom-call.1
= control target key start
LH: loop header
LB: loop body
LE: loop exit
PB: predicated region body
PF: predicated region fallthrough
CT: control target
= control target key end

     0   :  { %s59_s0 = inlined_call_operand.hbm [shape: c64[2,8,8], index: 0, kind: input, shape index: {}]   ;;  %s60_s1 = inlined_call_operand.vmem [shape: f32[2,8,8], index: 1, kind: output, shape index: {}]  }
   0x1   :  { %s2_s8 = scalar_lea.hbm %s59_s0, 256 }
   0x2   :  { %3 = vsyncpa [#allocation0], 0  ;;  %s4_s11 = sshll.u32 %s60_s1, 4  ;;  %s34_s14 = scalar_lea.hbm %s59_s0, 512  ;;  %s5_s11 = int_to_ptr.vmem [resolvable:$true] %s4_s11 }
   0x3   :  { %p11_p0 = scmp.ne.s32.totalorder %s2_s8, %s34_s14  ;;  %p13_p1 = scmp.lt.u32.totalorder %s2_s8, %s59_s0 }
   0x4   :  { %p14_p2 = scmp.lt.u32.totalorder %s34_s14, %s34_s14  ;;  %p16_p4 = scmp.lt.u32.totalorder %s34_s14, %s2_s8 }
   0x6   :  { %p15_p3 = por %p14_p2, %p13_p1 }
   0x8   :  { %p17_p5 = por %p16_p4, %p15_p3 }
   0xa   :  { %p18_p6 = pnand %p17_p5, %p11_p0 }
   0xc   :  { %21 = shalt.err (!%p18_p6)  }
   0xd   :  { %s22_s17 = scalar_lea.vmem %s5_s11, 256  ;;  %p27_p8 = scmp.lt.s32.totalorder %s5_s11, %s5_s11 }
   0xe   :  { %p23_p7 = scmp.ne.s32.totalorder %s5_s11, %s22_s17  ;;  %p28_p9 = scmp.lt.s32.totalorder %s22_s17, %s22_s17 }
  0x10   :  { %p29_p10 = por %p28_p9, %p27_p8 }
  0x12   :  { %p30_p11 = pnand %p29_p10, %p23_p7 }
  0x14   :  { %33 = shalt.err (!%p30_p11)  }
  0x15   :  { %7 = dma.hbm_to_vmem [thread:$0]  %s2_s8, 256, %s5_s11, [#allocation0] }
  0x16   :  { %35 = dma.done.wait [#allocation0], 256  }
  0x17   :  { %36 = vsyncadd [#allocation0], 4294967040 }
  0x18   :  { %9 = vsyncpa [#allocation0], 1 }

// kernel: custom-call.2
= control target key start
LH: loop header
LB: loop body
LE: loop exit
PB: predicated region body
PF: predicated region fallthrough
CT: control target
= control target key end

     0   :  { %s126_s0 = inlined_call_operand.vmem [shape: f32[2,1,1], index: 0, kind: input, shape index: {}]   ;;  %s127_s1 = inlined_call_operand.vmem [shape: f32[2,1,1], index: 1, kind: input, shape index: {}]   ;;  %s128_s2 = inlined_call_operand.hbm [shape: c64[2,1,1], index: 2, kind: output, shape index: {}]  }
   0x1   :  { %s87_s11 = scalar_lea.hbm %s128_s2, 16 }
   0x2   :  { %4 = vsyncpa [#allocation0], 0  ;;  %s5_s14 = sshll.u32 %s126_s0, 4  ;;  %s6_s14 = int_to_ptr.vmem [resolvable:$true] %s5_s14 }
   0x3   :  { %s18_s15 = scalar_lea.vmem %s6_s14, 16  ;;  %p23_p1 = scmp.lt.s32.totalorder %s6_s14, %s6_s14 }
   0x4   :  { %p19_p0 = scmp.ne.s32.totalorder %s6_s14, %s18_s15  ;;  %p24_p2 = scmp.lt.s32.totalorder %s18_s15, %s18_s15 }
   0x6   :  { %p25_p3 = por %p24_p2, %p23_p1 }
   0x8   :  { %p26_p4 = pnand %p25_p3, %p19_p0 }
   0xa   :  { %29 = shalt.err (!%p26_p4)  }
   0xb   :  { %p31_p5 = scmp.ne.s32.totalorder %s128_s2, %s87_s11  ;;  %s32_s0 = scalar_lea.hbm %s128_s2, 32 }
   0xc   :  { %p33_p6 = scmp.lt.u32.totalorder %s32_s0, %s87_s11  ;;  %p34_p7 = scmp.lt.u32.totalorder %s87_s11, %s128_s2 }
   0xe   :  { %p35_p8 = por %p34_p7, %p33_p6 }
  0x10   :  { %p36_p9 = pnand %p35_p8, %p31_p5 }
  0x12   :  { %39 = shalt.err (!%p36_p9)  }
  0x13   :  { %8 = dma.vmem_to_hbm [thread:$0]  %s6_s14, 16, %s128_s2, [#allocation0] }
  0x14   :  { %65 = dma.done.wait [#allocation0], 16  }
  0x15   :  { %66 = vsyncadd [#allocation0], 4294967280 }
  0x16   :  { %10 = vsyncpa [#allocation0], 1 }
  0x17   :  { %11 = vsyncpa [#allocation1], 0  ;;  %s12_s28 = sshll.u32 %s127_s1, 4  ;;  %s13_s28 = int_to_ptr.vmem [resolvable:$true] %s12_s28 }
  0x18   :  { %s40_s29 = scalar_lea.vmem %s13_s28, 16  ;;  %p45_p11 = scmp.lt.s32.totalorder %s13_s28, %s13_s28 }
  0x19   :  { %p41_p10 = scmp.ne.s32.totalorder %s13_s28, %s40_s29  ;;  %p46_p12 = scmp.lt.s32.totalorder %s40_s29, %s40_s29 }
  0x1b   :  { %p47_p13 = por %p46_p12, %p45_p11 }
  0x1d   :  { %p48_p0 = pnand %p47_p13, %p41_p10 }
  0x1f   :  { %51 = shalt.err (!%p48_p0)  }
  0x20   :  { %p53_p1 = scmp.ne.s32.totalorder %s87_s11, %s32_s0  ;;  %p56_p2 = scmp.lt.u32.totalorder %s32_s0, %s32_s0 }
  0x22   :  { %p57_p3 = por %p56_p2, %p34_p7 }
  0x24   :  { %p59_p4 = por %p57_p3, %p33_p6 }
  0x26   :  { %p60_p5 = pnand %p59_p4, %p53_p1 }
  0x28   :  { %63 = shalt.err (!%p60_p5)  }
  0x29   :  { %15 = dma.vmem_to_hbm [thread:$0]  %s13_s28, 16, %s87_s11, [#allocation1] }
  0x2a   :  { %67 = dma.done.wait [#allocation1], 16  }
  0x2b   :  { %68 = vsyncadd [#allocation1], 4294967280 }
  0x2c   :  { %17 = vsyncpa [#allocation1], 1 }

// kernel: beamforming_forward_pallas.1
= control target key start
LH: loop header
LB: loop body
LE: loop exit
PB: predicated region body
PF: predicated region fallthrough
CT: control target
= control target key end

     0   :  { %v3113_v0 = vmov 0.0|0.0   ;;  %vm3114_vm0 = vmmov 0   ;;  %v3115_v4 = vmov 0.0   ;;  %vm28_vm1 = vcmask 523264   ;;  %s3116_s26 = smov 120   ;;  %s3123_s27 = smov 124   ;;  %s3577_s1 = inlined_call_operand.vmem [shape: f32[160,64], index: 1, kind: input, shape index: {}]   ;;  %s3578_s0 = inlined_call_operand.vmem [shape: f32[2,64], index: 0, kind: input, shape index: {}]   ;;  %s3579_s2 = inlined_call_operand.vmem [shape: f32[16,16], index: 2, kind: input, shape index: {}]   ;;  %s3580_s3 = inlined_call_operand.vmem [shape: f32[2,2], index: 3, kind: output, shape index: {}]  }
   0x1   :  { %2862 = vmatprep.subr.bf16.mxu0 %v3113_v0  ;;  %v15_v1 = vld [vmem:[%s3577_s1] sm:$0xff]  ;;  %v16_v2 = vld [vmem:[%s3577_s1 + $0x8] sm:$0xff]  ;;  %v17_v3 = vld [vmem:[%s3577_s1 + $0x10] sm:$0xff]  ;;  %2566 = vmatprep.mubr.msk.f32.mxu0 %vm3114_vm0, %v3115_v4  ;;  %vm570_vm2 = vcmask 517120   ;;  %s3124_s4 = smov 8   ;;  %s3126_s5 = smov 4  }
   0x2   :  { %v33_v5 = vand.u32 4294901760, %v15_v1  ;;  %v36_v6 = vand.u32 4294901760, %v16_v2  ;;  %v18_v7 = vld [vmem:[%s3577_s1 + $0x18] sm:$0xff]  ;;  %v39_v8 = vand.u32 4294901760, %v17_v3  ;;  %v19_v9 = vld [vmem:[%s3577_s1 + $0x20] sm:$0xff]  ;;  %v20_v10 = vld [vmem:[%s3577_s1 + $0x28] sm:$0xff]  ;;  %2934 = vmatprep.subr.bf16.mxu1 %v3113_v0  ;;  %2680 = vmatprep.mubr.msk.f32.mxu1 %vm3114_vm0, %v3115_v4 }
   0x3   :  { %v42_v11 = vand.u32 4294901760, %v18_v7  ;;  %v14_v15 = vld [vmem:[%s3578_s0] sm:$0x3]  ;;  %v45_v18 = vand.u32 4294901760, %v19_v9  ;;  %v48_v19 = vand.u32 4294901760, %v20_v10  ;;  %v21_v20 = vld [vmem:[%s3577_s1 + $0x30] sm:$0xff] }
   0x4   :  { %v3172_v12 = vpack.c.bf16 %v36_v6, %v33_v5  ;;  %v3174_v13 = vsub.f32 %v15_v1, %v33_v5  ;;  %v3176_v14 = vsub.f32 %v16_v2, %v36_v6  ;;  %v3181_v16 = vsub.f32 %v17_v3, %v39_v8  ;;  %v22_v21 = vld [vmem:[%s3577_s1 + $0x38] sm:$0xff] }
   0x5   :  { %v3183_v17 = vsub.f32 %v18_v7, %v42_v11  ;;  %v3192_v22 = vpack.c.bf16 %v42_v11, %v39_v8  ;;  %v30_v23 = vsel %vm28_vm1, %v14_v15, 0  ;;  %v51_v27 = vand.u32 4294901760, %v21_v20  ;;  %v607_v11 = vld [vmem:[%s3577_s1 + $0x48] sm:$0xff] }
   0x6   :  { %2864 = vmatpush3.bf16.msra.mxu0 %v3172_v12  ;;  %v3196_v24 = vand.u32 4294901760, %v30_v23  ;;  %v118_v25 = vand.u32 4294901760, %v3174_v13  ;;  %v125_v26 = vand.u32 4294901760, %v3176_v14  ;;  %v54_v28 = vand.u32 4294901760, %v22_v21 }
   0x7   :  { %2865 = vmatprep.subr.bf16.mxu0 %v3113_v0  ;;  %v3200_v29 = vpack.c.bf16 %v48_v19, %v45_v18  ;;  %v132_v31 = vand.u32 4294901760, %v3181_v16  ;;  %v139_v32 = vand.u32 4294901760, %v3183_v17  ;;  %v3208_v33 = vsub.f32 %v19_v9, %v45_v18 }
   0x8   :  { %v3203_v30 = vsub.f32 %v30_v23, %v3196_v24  ;;  %v3210_v34 = vsub.f32 %v20_v10, %v48_v19  ;;  %v119_v35 = vsub.f32 %v3174_v13, %v118_v25  ;;  %v126_v36 = vsub.f32 %v3176_v14, %v125_v26 }
   0x9   :  { %v3220_v38 = vpack.c.bf16 %v54_v28, %v51_v27  ;;  %v3222_v39 = vsub.f32 %v21_v20, %v51_v27  ;;  %v3224_v40 = vsub.f32 %v22_v21, %v54_v28  ;;  %v133_v42 = vsub.f32 %v3181_v16, %v132_v31  ;;  %v611_v21 = vld [vmem:[%s3577_s1 + $0x68] sm:$0xff] }
   0xa   :  { %2867 = vmatpush3.bf16.msra.mxu0 %v3192_v22  ;;  %v107_v37 = vand.u32 4294901760, %v3203_v30  ;;  %v140_v43 = vsub.f32 %v3183_v17, %v139_v32  ;;  %v120_v44 = vand.u32 4294901760, %v119_v35  ;;  %v127_v45 = vand.u32 4294901760, %v126_v36 }
   0xb   :  { %2868 = vmatprep.subr.bf16.mxu0 %v3113_v0  ;;  %v146_v46 = vand.u32 4294901760, %v3208_v33  ;;  %v153_v47 = vand.u32 4294901760, %v3210_v34  ;;  %v134_v49 = vand.u32 4294901760, %v133_v42  ;;  %v160_v51 = vand.u32 4294901760, %v3222_v39 }
   0xc   :  { %v108_v41 = vsub.f32 %v3203_v30, %v107_v37  ;;  %v141_v50 = vand.u32 4294901760, %v140_v43  ;;  %v2875_v52 = vpack.c.bf16 %v127_v45, %v120_v44  ;;  %v167_v55 = vand.u32 4294901760, %v3224_v40 }
   0xd   :  { %v147_v53 = vsub.f32 %v3208_v33, %v146_v46  ;;  %v154_v54 = vsub.f32 %v3210_v34, %v153_v47  ;;  %v161_v56 = vsub.f32 %v3222_v39, %v160_v51  ;;  %v2887_v2 = vpack.c.bf16 %v3176_v14, %v3174_v13 }
   0xe   :  { %2870 = vmatpush3.bf16.msra.mxu0 %v3200_v29  ;;  %v109_v48 = vand.u32 4294901760, %v108_v41  ;;  %v2878_v57 = vpack.c.bf16 %v141_v50, %v134_v49  ;;  %v168_v60 = vsub.f32 %v3224_v40, %v167_v55  ;;  %v2890_v3 = vpack.c.bf16 %v3183_v17, %v3181_v16  ;;  %v609_v16 = vld [vmem:[%s3577_s1 + $0x58] sm:$0xff]  ;;  %v610_v17 = vld [vmem:[%s3577_s1 + $0x60] sm:$0xff] }
   0xf   :  { %2871 = vmatprep.subr.bf16.mxu0 %v3113_v0  ;;  %v148_v58 = vand.u32 4294901760, %v147_v53  ;;  %v155_v59 = vand.u32 4294901760, %v154_v54  ;;  %v162_v62 = vand.u32 4294901760, %v161_v56  ;;  %v2893_v5 = vpack.c.bf16 %v3210_v34, %v3208_v33 }
  0x10   :  { %v169_v63 = vand.u32 4294901760, %v168_v60  ;;  %v2896_v6 = vpack.c.bf16 %v3224_v40, %v3222_v39  ;;  %v2911_v7 = vpack.c.bf16 %v125_v26, %v118_v25  ;;  %v2914_v8 = vpack.c.bf16 %v139_v32, %v132_v31 }
  0x11   :  { %v2881_v61 = vpack.c.bf16 %v155_v59, %v148_v58  ;;  %v2917_v9 = vpack.c.bf16 %v153_v47, %v146_v46  ;;  %v2920_v10 = vpack.c.bf16 %v167_v55, %v160_v51  ;;  %v624_v13 = vand.u32 4294901760, %v607_v11 }
  0x12   :  { %2873 = vmatpush3.bf16.msra.mxu0 %v3220_v38  ;;  %v2884_v1 = vpack.c.bf16 %v169_v63, %v162_v62  ;;  %v630_v18 = vand.u32 4294901760, %v609_v16  ;;  %v633_v19 = vand.u32 4294901760, %v610_v17  ;;  %v636_v23 = vand.u32 4294901760, %v611_v21 }
  0x13   :  { %2874 = vmatprep.subr.bf16.mxu0 %v3113_v0  ;;  %v3339_v25 = vsub.f32 %v607_v11, %v624_v13 }
  0x14   :  { %v3329_v20 = vpack.c.bf16 %v633_v19, %v630_v18  ;;  %v3343_v27 = vsub.f32 %v609_v16, %v630_v18  ;;  %v3345_v28 = vsub.f32 %v610_v17, %v633_v19  ;;  %v3355_v32 = vsub.f32 %v611_v21, %v636_v23 }
  0x15   :  { %2567 = vmatmul.mubr.f32.vlgmr.msra.gmra.mrb[0].mxu0 %v109_v48  ;;  %v709_v36 = vand.u32 4294901760, %v3339_v25 }
  0x16   :  { %2876 = vmatpush3.bf16.msra.mxu0 %v2875_v52  ;;  %2585 = vmatprep.mubr.msk.f32.mxu0 %vm3114_vm0, %v3115_v4  ;;  %v723_v45 = vand.u32 4294901760, %v3343_v27  ;;  %v730_v46 = vand.u32 4294901760, %v3345_v28  ;;  %v737_v52 = vand.u32 4294901760, %v3355_v32 }
  0x17   :  { %2877 = vmatprep.subr.bf16.mxu0 %v3113_v0  ;;  %v710_v41 = vsub.f32 %v3339_v25, %v709_v36 }
  0x18   :  { %v724_v48 = vsub.f32 %v3343_v27, %v723_v45  ;;  %v731_v49 = vsub.f32 %v3345_v28, %v730_v46  ;;  %v738_v55 = vsub.f32 %v3355_v32, %v737_v52 }
  0x19   :  { %v711_v43 = vand.u32 4294901760, %v710_v41 }
  0x1a   :  { %2879 = vmatpush3.bf16.msra.mxu0 %v2878_v57  ;;  %v725_v50 = vand.u32 4294901760, %v724_v48  ;;  %v732_v51 = vand.u32 4294901760, %v731_v49  ;;  %v739_v57 = vand.u32 4294901760, %v738_v55 }
  0x1b   :  { %2880 = vmatprep.subr.bf16.mxu0 %v3113_v0 }
  0x1c   :  { %v3381_v54 = vpack.c.bf16 %v732_v51, %v725_v50  ;;  %v595_v51 = vlaneseq }
  0x1e   :  { %2882 = vmatpush3.bf16.msra.mxu0 %v2881_v61 }
  0x1f   :  { %2883 = vmatprep.subr.bf16.mxu0 %v3113_v0 }
  0x22   :  { %2885 = vmatpush3.bf16.msra.mxu0 %v2884_v1 }
  0x23   :  { %2886 = vmatprep.subr.bf16.mxu0 %v3113_v0 }
  0x25   :  { %2586 = vmatmul.mubr.f32.vlgmr.msra.gmra.mrb[0].mxu0 %v3196_v24 }
  0x26   :  { %2888 = vmatpush3.bf16.msra.mxu0 %v2887_v2  ;;  %2604 = vmatprep.mubr.msk.f32.mxu0 %vm3114_vm0, %v3115_v4 }
  0x27   :  { %2889 = vmatprep.subr.bf16.mxu0 %v3113_v0 }
  0x2a   :  { %2891 = vmatpush3.bf16.msra.mxu0 %v2890_v3 }
  0x2b   :  { %2892 = vmatprep.subr.bf16.mxu0 %v3113_v0 }
  0x2e   :  { %2894 = vmatpush3.bf16.msra.mxu0 %v2893_v5 }
  0x2f   :  { %2895 = vmatprep.subr.bf16.mxu0 %v3113_v0 }
  0x32   :  { %2897 = vmatpush3.bf16.msra.mxu0 %v2896_v6  ;;  %v2962_v6 = vpack.c.bf16 %v3345_v28, %v3343_v27 }
  0x33   :  { %2898 = vmatprep.subr.bf16.mxu0 %v3113_v0 }
  0x35   :  { %2605 = vmatmul.mubr.f32.vlgmr.msra.gmra.mrb[0].mxu0 %v3203_v30  ;;  %v614_v30 = vld [vmem:[%s3577_s1 + $0x80] sm:$0xff] }
  0x36   :  { %2900 = vmatpush3.bf16.msra.mxu0 %v3172_v12  ;;  %2623 = vmatprep.mubr.msk.f32.mxu0 %vm3114_vm0, %v3115_v4  ;;  %v645_v35 = vand.u32 4294901760, %v614_v30 }
  0x37   :  { %2901 = vmatprep.subr.bf16.mxu0 %v3113_v0 }
  0x38   :  { %v3367_v40 = vsub.f32 %v614_v30, %v645_v35 }
  0x3a   :  { %2903 = vmatpush3.bf16.msra.mxu0 %v3192_v22  ;;  %v758_v60 = vand.u32 4294901760, %v3367_v40 }
  0x3b   :  { %2904 = vmatprep.subr.bf16.mxu0 %v3113_v0 }
  0x3c   :  { %v759_v63 = vsub.f32 %v3367_v40, %v758_v60 }
  0x3e   :  { %2906 = vmatpush3.bf16.msra.mxu0 %v3200_v29  ;;  %v760_v2 = vand.u32 4294901760, %v759_v63 }
  0x3f   :  { %2907 = vmatprep.subr.bf16.mxu0 %v3113_v0 }
  0x42   :  { %2909 = vmatpush3.bf16.msra.mxu0 %v3220_v38 }
  0x43   :  { %2910 = vmatprep.subr.bf16.mxu0 %v3113_v0 }
  0x45   :  { %2624 = vmatmul.mubr.f32.vlgmr.msra.gmra.mrb[0].mxu0 %v107_v37 }
  0x46   :  { %2912 = vmatpush3.bf16.msra.mxu0 %v2911_v7  ;;  %2642 = vmatprep.mubr.msk.f32.mxu0 %vm3114_vm0, %v3115_v4 }
  0x47   :  { %2913 = vmatprep.subr.bf16.mxu0 %v3113_v0 }
  0x4a   :  { %2915 = vmatpush3.bf16.msra.mxu0 %v2914_v8 }
  0x4b   :  { %2916 = vmatprep.subr.bf16.mxu0 %v3113_v0 }
  0x4e   :  { %2918 = vmatpush3.bf16.msra.mxu0 %v2917_v9 }
  0x4f   :  { %2919 = vmatprep.subr.bf16.mxu0 %v3113_v0 }
  0x52   :  { %2921 = vmatpush3.bf16.msra.mxu0 %v2920_v10  ;;  %v3401_v10 = vpack.c.bf16 %v730_v46, %v723_v45 }
  0x53   :  { %2922 = vmatprep.subr.bf16.mxu0 %v3113_v0 }
  0x55   :  { %2643 = vmatmul.mubr.f32.vlgmr.msra.gmra.mrb[0].mxu0 %v3196_v24 }
  0x56   :  { %2924 = vmatpush3.bf16.msra.mxu0 %v3172_v12  ;;  %2661 = vmatprep.mubr.msk.f32.mxu0 %vm3114_vm0, %v3115_v4  ;;  %v608_v12 = vld [vmem:[%s3577_s1 + $0x50] sm:$0xff] }
  0x57   :  { %2925 = vmatprep.subr.bf16.mxu0 %v3113_v0  ;;  %v627_v14 = vand.u32 4294901760, %v608_v12 }
  0x59   :  { %v3319_v15 = vpack.c.bf16 %v627_v14, %v624_v13  ;;  %v3341_v26 = vsub.f32 %v608_v12, %v627_v14  ;;  %v2396_v13 = vld [vmem:[%s3577_s1 + $0x40] ss:$0 sm:$0xff] }
  0x5a   :  { %2927 = vmatpush3.bf16.msra.mxu0 %v3192_v22  ;;  %v612_v22 = vld [vmem:[%s3577_s1 + $0x70] sm:$0xff] }
  0x5b   :  { %2928 = vmatprep.subr.bf16.mxu0 %v3113_v0  ;;  %2936 = vmatpush3.bf16.msra.mxu1 %v3319_v15  ;;  %v716_v37 = vand.u32 4294901760, %v3341_v26  ;;  %v2959_v5 = vpack.c.bf16 %v3341_v26, %v3339_v25 }
  0x5c   :  { %2937 = vmatprep.subr.bf16.mxu1 %v3113_v0 }
  0x5d   :  { %v717_v42 = vsub.f32 %v3341_v26, %v716_v37  ;;  %v3399_v9 = vpack.c.bf16 %v716_v37, %v709_v36 }
  0x5e   :  { %2930 = vmatpush3.bf16.msra.mxu0 %v3200_v29  ;;  %v613_v29 = vld [vmem:[%s3577_s1 + $0x78] sm:$0xff] }
  0x5f   :  { %2931 = vmatprep.subr.bf16.mxu0 %v3113_v0  ;;  %2939 = vmatpush3.bf16.msra.mxu1 %v3329_v20  ;;  %v642_v34 = vand.u32 4294901760, %v613_v29  ;;  %v718_v44 = vand.u32 4294901760, %v717_v42 }
  0x60   :  { %2940 = vmatprep.subr.bf16.mxu1 %v3113_v0 }
  0x61   :  { %v3365_v39 = vpack.c.bf16 %v645_v35, %v642_v34  ;;  %v3375_v47 = vpack.c.bf16 %v718_v44, %v711_v43 }
  0x62   :  { %2933 = vmatpush3.bf16.msra.mxu0 %v3220_v38  ;;  %v3362_v38 = vsub.f32 %v613_v29, %v642_v34 }
  0x63   :  { %3006 = vmatprep.subr.bf16.mxu0 %v3113_v0 }
  0x64   :  { %v751_v59 = vand.u32 4294901760, %v3362_v38  ;;  %v2968_v8 = vpack.c.bf16 %v3367_v40, %v3362_v38 }
  0x65   :  { %2662 = vmatmul.mubr.f32.vlgmr.msra.gmra.mrb[0].mxu0 %v3196_v24  ;;  %v639_v24 = vand.u32 4294901760, %v612_v22 }
  0x66   :  { %2782 = vmatprep.mubr.msk.f32.mxu0 %vm3114_vm0, %v3115_v4  ;;  %v752_v62 = vsub.f32 %v3362_v38, %v751_v59  ;;  %v3405_v12 = vpack.c.bf16 %v758_v60, %v751_v59 }
  0x67   :  { %v3353_v31 = vpack.c.bf16 %v639_v24, %v636_v23  ;;  %v3357_v33 = vsub.f32 %v612_v22, %v639_v24 }
  0x68   :  { %v753_v1 = vand.u32 4294901760, %v752_v62 }
  0x69   :  { %2942 = vmatpush3.bf16.msra.mxu1 %v3353_v31  ;;  %v744_v53 = vand.u32 4294901760, %v3357_v33  ;;  %v2965_v7 = vpack.c.bf16 %v3357_v33, %v3355_v32 }
  0x6a   :  { %2943 = vmatprep.subr.bf16.mxu1 %v3113_v0  ;;  %v2956_v3 = vpack.c.bf16 %v760_v2, %v753_v1 }
  0x6b   :  { %v745_v56 = vsub.f32 %v3357_v33, %v744_v53  ;;  %v3403_v11 = vpack.c.bf16 %v744_v53, %v737_v52  ;;  %v3411_v52 = vshrl.u32 %v595_v51, 7  ;;  %v590_v53 = vld [vmem:[%s3577_s1 + $0x41] sm:$0x1] }
  0x6d   :  { %2945 = vmatpush3.bf16.msra.mxu1 %v3365_v39  ;;  %v746_v58 = vand.u32 4294901760, %v745_v56  ;;  %v597_v55 = vsub.s32 0, %v3411_v52 }
  0x6e   :  { %2946 = vmatprep.subr.bf16.mxu1 %v3113_v0 }
  0x6f   :  { %v3387_v61 = vpack.c.bf16 %v746_v58, %v739_v57  ;;  %v591_v58 = vld [vmem:[%s3577_s1 + $0x42] sm:$0x1] }
 0x138   :  { %v565_v14 = vpop.f32.mrb[0].mxu0 }
 0x139   :  { %v3042_v16 = vadd.f32 %v2396_v13, %v565_v14  ;;  %v2663_v17 = vpop.f32.mrb[1].mxu0 }
 0x13b   :  { %v569_v18 = vmax.f32 %v3042_v16, 0.0 }
 0x13d   :  { %v571_v19 = vsel %vm570_vm2, %v569_v18, 0.0  ;;  %v578_v21 = vmul.f32 %v569_v18, %v569_v18 }
 0x13e   :  { %v572_v22 = vrot.slane %v571_v19, 4 }
 0x13f   :  { %v579_v23 = vsel %vm570_vm2, %v578_v21, 0.0 }
 0x140   :  { %v573_v24 = vadd.f32 %v572_v22, %v571_v19  ;;  %v580_v29 = vrot.slane %v579_v23, 4 }
 0x142   :  { %v574_v30 = vrot.slane %v573_v24, 2  ;;  %v581_v34 = vadd.f32 %v580_v29, %v579_v23 }
 0x144   :  { %v575_v35 = vadd.f32 %v574_v30, %v573_v24  ;;  %v582_v36 = vrot.slane %v581_v34, 2  ;;  %v3120_v24 = vmov 2102212464  }
 0x146   :  { %v576_v37 = vrot.slane %v575_v35, 1  ;;  %v583_v41 = vadd.f32 %v582_v36, %v581_v34  ;;  %v3121_v34 = vmov 920167782  }
 0x148   :  { %v577_v42 = vadd.f32 %v576_v37, %v575_v35  ;;  %v584_v43 = vrot.slane %v583_v41, 1  ;;  %v3122_v37 = vmov 1326507024  }
 0x14a   :  { %v585_v44 = vadd.f32 %v584_v43, %v583_v41  ;;  %v586_v45 = vmul.f32 0.5, %v577_v42 }
 0x14c   :  { %v587_v46 = vmul.f32 0.5, %v585_v44  ;;  %v588_v48 = vmul.f32 %v586_v45, %v586_v45 }
 0x14e   :  { %v589_v49 = vsub.f32 %v587_v46, %v588_v48 }
 0x150   :  { %v592_v50 = vadd.f32 1e-05, %v589_v49 }
 0x152   :  { %3103 = vrsqrt.f32 %v592_v50 }
 0x15c   :  { %v3104_v56 = vpop.eup %3103 }
 0x15d   :  { %v594_v57 = vmul.f32 %v3104_v56, %v590_v53 }
 0x15f   :  { %v598_v59 = vrot.slane %v594_v57, %v597_v55  ;;  %v600_v60 = vmul.f32 %v594_v57, %v586_v45 }
 0x161   :  { %v601_v62 = vsub.f32 %v591_v58, %v600_v60  ;;  %v599_v63 = vmul.f32 %v598_v59, %v569_v18  ;;  %v3119_v18 = vmov 2131351028  }
 0x163   :  { %v605_v1 = vrot.slane %v601_v62, %v597_v55 }
 0x165   :  { %v606_v2 = vadd.f32 %v605_v1, %v599_v63 }
 0x167   :  { %v621_v13 = vsel %vm28_vm1, %v606_v2, 0 }
 0x168   :  { %v696_v14 = vand.u32 4294901760, %v621_v13 }
 0x16a   :  { %v697_v16 = vsub.f32 %v621_v13, %v696_v14 }
 0x16c   :  { %v698_v17 = vand.u32 4294901760, %v697_v16 }
 0x16e   :  { %v699_v19 = vsub.f32 %v697_v16, %v698_v17 }
 0x170   :  { %v700_v21 = vand.u32 4294901760, %v699_v19 }
 0x172   :  { %2681 = vmatmul.mubr.f32.vlgmr.msra.gmra.mrb[0].mxu1 %v700_v21 }
 0x173   :  { %2948 = vmatpush3.bf16.msra.mxu1 %v3375_v47  ;;  %2699 = vmatprep.mubr.msk.f32.mxu1 %vm3114_vm0, %v3115_v4 }
 0x174   :  { %2949 = vmatprep.subr.bf16.mxu1 %v3113_v0 }
 0x177   :  { %2951 = vmatpush3.bf16.msra.mxu1 %v3381_v54 }
 0x178   :  { %2952 = vmatprep.subr.bf16.mxu1 %v3113_v0 }
 0x17b   :  { %2954 = vmatpush3.bf16.msra.mxu1 %v3387_v61 }
 0x17c   :  { %2955 = vmatprep.subr.bf16.mxu1 %v3113_v0 }
 0x17f   :  { %2957 = vmatpush3.bf16.msra.mxu1 %v2956_v3 }
 0x180   :  { %2958 = vmatprep.subr.bf16.mxu1 %v3113_v0 }
 0x182   :  { %2700 = vmatmul.mubr.f32.vlgmr.msra.gmra.mrb[0].mxu1 %v696_v14 }
 0x183   :  { %2960 = vmatpush3.bf16.msra.mxu1 %v2959_v5  ;;  %2718 = vmatprep.mubr.msk.f32.mxu1 %vm3114_vm0, %v3115_v4 }
 0x184   :  { %2961 = vmatprep.subr.bf16.mxu1 %v3113_v0 }
 0x187   :  { %2963 = vmatpush3.bf16.msra.mxu1 %v2962_v6 }
 0x188   :  { %2964 = vmatprep.subr.bf16.mxu1 %v3113_v0 }
 0x18b   :  { %2966 = vmatpush3.bf16.msra.mxu1 %v2965_v7 }
 0x18c   :  { %2967 = vmatprep.subr.bf16.mxu1 %v3113_v0 }
 0x18f   :  { %2969 = vmatpush3.bf16.msra.mxu1 %v2968_v8  ;;  %v3117_v8 = vmov 683565275  }
 0x190   :  { %2970 = vmatprep.subr.bf16.mxu1 %v3113_v0 }
 0x192   :  { %2719 = vmatmul.mubr.f32.vlgmr.msra.gmra.mrb[0].mxu1 %v697_v16 }
 0x193   :  { %2972 = vmatpush3.bf16.msra.mxu1 %v3319_v15  ;;  %2737 = vmatprep.mubr.msk.f32.mxu1 %vm3114_vm0, %v3115_v4 }
 0x194   :  { %2973 = vmatprep.subr.bf16.mxu1 %v3113_v0 }
 0x197   :  { %2975 = vmatpush3.bf16.msra.mxu1 %v3329_v20 }
 0x198   :  { %2976 = vmatprep.subr.bf16.mxu1 %v3113_v0 }
 0x19b   :  { %2978 = vmatpush3.bf16.msra.mxu1 %v3353_v31 }
 0x19c   :  { %2979 = vmatprep.subr.bf16.mxu1 %v3113_v0 }
 0x19f   :  { %2981 = vmatpush3.bf16.msra.mxu1 %v3365_v39 }
 0x1a0   :  { %2982 = vmatprep.subr.bf16.mxu1 %v3113_v0 }
 0x1a2   :  { %2738 = vmatmul.mubr.f32.vlgmr.msra.gmra.mrb[0].mxu1 %v698_v17 }
 0x1a3   :  { %2984 = vmatpush3.bf16.msra.mxu1 %v3399_v9  ;;  %2756 = vmatprep.mubr.msk.f32.mxu1 %vm3114_vm0, %v3115_v4 }
 0x1a4   :  { %2985 = vmatprep.subr.bf16.mxu1 %v3113_v0 }
 0x1a7   :  { %2987 = vmatpush3.bf16.msra.mxu1 %v3401_v10  ;;  %v3118_v10 = vmov 2475754826  }
 0x1a8   :  { %2988 = vmatprep.subr.bf16.mxu1 %v3113_v0 }
 0x1ab   :  { %2990 = vmatpush3.bf16.msra.mxu1 %v3403_v11 }
 0x1ac   :  { %2991 = vmatprep.subr.bf16.mxu1 %v3113_v0 }
 0x1af   :  { %2993 = vmatpush3.bf16.msra.mxu1 %v3405_v12 }
 0x1b0   :  { %2994 = vmatprep.subr.bf16.mxu1 %v3113_v0 }
 0x1b2   :  { %2757 = vmatmul.mubr.f32.vlgmr.msra.gmra.mrb[0].mxu1 %v696_v14 }
 0x1b3   :  { %2996 = vmatpush3.bf16.msra.mxu1 %v3319_v15  ;;  %2775 = vmatprep.mubr.msk.f32.mxu1 %vm3114_vm0, %v3115_v4  ;;  %v2397_v15 = vld [vmem:[%s3577_s1 + $0x88] ss:$0 sm:$0xff] }
 0x1b4   :  { %2997 = vmatprep.subr.bf16.mxu1 %v3113_v0 }
 0x1b7   :  { %2999 = vmatpush3.bf16.msra.mxu1 %v3329_v20 }
 0x1b8   :  { %3000 = vmatprep.subr.bf16.mxu1 %v3113_v0 }
 0x1bb   :  { %3002 = vmatpush3.bf16.msra.mxu1 %v3353_v31 }
 0x1bc   :  { %3003 = vmatprep.subr.bf16.mxu1 %v3113_v0 }
 0x1bf   :  { %3005 = vmatpush3.bf16.msra.mxu1 %v3365_v39 }
 0x1c0   :  { %3024 = vmatprep.subr.bf16.mxu1 %v3113_v0 }
 0x1c2   :  { %2776 = vmatmul.mubr.f32.vlgmr.msra.gmra.mrb[0].mxu1 %v696_v14 }
 0x1c3   :  { %2824 = vmatprep.mubr.msk.f32.mxu1 %vm3114_vm0, %v3115_v4 }
 0x295   :  { %v1156_v25 = vpop.f32.mrb[0].mxu1 }
 0x296   :  { %v3483_v20 = vadd.f32 %v2397_v15, %v1156_v25  ;;  %v2777_v26 = vpop.f32.mrb[1].mxu1 }
 0x298   :  { %v1160_v27 = vmul.f32 0.5, %v3483_v20  ;;  %v1371_v28 = vmul.f32 %v3483_v20, %v3483_v20 }
 0x29a   :  { %3105 = vtanh.f32 %v1160_v27  ;;  %1373 = vrot.lane.b32.xlu1 %v1371_v28, %s3116_s26 }
 0x2a4   :  { %v3106_v31 = vpop.eup %3105 }
 0x2a5   :  { %v1162_v32 = vadd.f32 1.0, %v3106_v31 }
 0x2a7   :  { %v3489_v33 = vmul.f32 1.5707964, %v1162_v32 }
 0x2a9   :  { %v1167_v38 = vand.u32 2139095040, %v3489_v33  ;;  %v1164_v54 = vand.u32 2147483647, %v3489_v33  ;;  %vm1166_vm10 = vcmp.lt.s32.totalorder %v3489_v33, 0 }
 0x2ab   :  { %v1168_v39 = vshrl.u32 %v1167_v38, 23  ;;  %v1171_v6 = vand.u32 8388607, %v1164_v54  ;;  %vm1165_vm11 = vcmp.le.f32.partialorder %v1164_v54, 0.7853982 }
 0x2ad   :  { %v2398_v40 = vadd.s32 4294967169, %v1168_v39  ;;  %v1172_v42 = vor.u32 8388608, %v1171_v6 }
 0x2af   :  { %v1174_v47 = vadd.s32 1, %v2398_v40  ;;  %v1212_v60 = vshll.u32 %v1172_v42, 8 }
 0x2b1   :  { %vm1175_vm3 = vcmp.gt.s32.totalorder %v1174_v47, 0 }
 0x2b2   :  { %v1176_v61 = vsel %vm1175_vm3, %v1174_v47, 0  ;;  %vm1256_vm3 = vweird.f32 %v3489_v33 }
 0x2b3   :  { %v1178_v3 = vand.u32 31, %v1176_v61  ;;  %v1177_v7 = vshrl.u32 %v1176_v61, 5 }
 0x2b5   :  { %v1179_v5 = vsub.s32 32, %v1178_v3  ;;  %v1181_v9 = vshll.u32 %v3117_v8, %v1178_v3  ;;  %v1184_v11 = vshll.u32 %v3118_v10, %v1178_v3  ;;  %v1187_v23 = vshll.u32 %v3119_v18, %v1178_v3 }
 0x2b6   :  { %v1190_v30 = vshll.u32 %v3120_v24, %v1178_v3  ;;  %v1193_v36 = vshll.u32 %v3121_v34, %v1178_v3  ;;  %vm1196_vm4 = vcmp.lt.s32.totalorder %v1177_v7, 1  ;;  %vm1199_vm5 = vcmp.lt.s32.totalorder %v1177_v7, 4 }
 0x2b7   :  { %v1182_v12 = vshrl.u32 %v3118_v10, %v1179_v5  ;;  %v1185_v22 = vshrl.u32 %v3119_v18, %v1179_v5  ;;  %v1188_v29 = vshrl.u32 %v3120_v24, %v1179_v5  ;;  %v1191_v35 = vshrl.u32 %v3121_v34, %v1179_v5 }
 0x2b8   :  { %v1194_v41 = vshrl.u32 %v3122_v37, %v1179_v5  ;;  %v1180_v55 = vshrl.u32 %v3117_v8, %v1179_v5  ;;  %vm1198_vm6 = vcmp.lt.s32.totalorder %v1177_v7, 3  ;;  %vm1197_vm7 = vcmp.lt.s32.totalorder %v1177_v7, 2 }
 0x2b9   :  { %v1183_v43 = vor.u32 %v1182_v12, %v1181_v9  ;;  %v1186_v44 = vor.u32 %v1185_v22, %v1184_v11  ;;  %v1189_v45 = vor.u32 %v1188_v29, %v1187_v23  ;;  %v1192_v46 = vor.u32 %v1191_v35, %v1190_v30 }
 0x2ba   :  { %v1195_v48 = vor.u32 %v1194_v41, %v1193_v36 }
 0x2bb   :  { %v1201_v49 = vsel %vm1199_vm5, %v1189_v45, 2102212464  ;;  %v1204_v50 = vsel %vm1196_vm4, %v1183_v43, %v1186_v44  ;;  %v1208_v53 = vsel %vm1196_vm4, %v1186_v44, %v1189_v45  ;;  %v1205_v56 = vsel %vm1199_vm5, %v1192_v46, 920167782 }
 0x2bc   :  { %v1209_v57 = vsel %vm1199_vm5, %v1195_v48, 1326507024  ;;  %v1206_v58 = vsel %vm1198_vm6, %v1189_v45, %v1205_v56  ;;  %v1200_v62 = vsel %vm1196_vm4, %v1180_v55, %v1183_v43  ;;  %v1202_v63 = vsel %vm1198_vm6, %v1186_v44, %v1201_v49 }
 0x2bd   :  { %v1210_v59 = vsel %vm1198_vm6, %v1192_v46, %v1209_v57  ;;  %v1207_v1 = vsel %vm1197_vm7, %v1204_v50, %v1206_v58  ;;  %v1203_v19 = vsel %vm1197_vm7, %v1200_v62, %v1202_v63  ;;  %vm1376_vm4 = vcmask 58368  }
 0x2be   :  { %v1211_v2 = vsel %vm1197_vm7, %v1208_v53, %v1210_v59  ;;  %v3498_v16 = vmul.u32.u64.low %v1212_v60, %v1207_v1  ;;  %v3499_v17 = vmul.u32.u64.high %v1212_v60, %v1207_v1, %v3498_v16  ;;  %v1219_v15 = vmul.u32 %v1212_v60, %v1203_v19 }
 0x2bf   :  { %v3495_v13 = vmul.u32.u64.low %v1212_v60, %v1211_v2  ;;  %v3496_v14 = vmul.u32.u64.high %v1212_v60, %v1211_v2, %v3495_v13  ;;  %v1404_v60 = vld [vmem:[%s3579_s2] sm:$0xff]  ;;  %vm1386_vm5 = vcmask 31744  }
 0x2c0   :  { %v1222_v21 = vadd.s32 1, %v3499_v17  ;;  %v1411_v62 = vand.u32 4294901760, %v1404_v60 }
 0x2c1   :  { %vm1221_vm8 = vc.u32 %v3496_v14, %v3498_v16  ;;  %v1220_v3 = vadd.s32 %v3498_v16, %v3496_v14 }
 0x2c2   :  { %v1223_v25 = vsel %vm1221_vm8, %v1222_v21, %v3499_v17  ;;  %v1489_v2 = vsub.f32 %v1404_v60, %v1411_v62  ;;  %vm1392_vm8 = vcmask 64512  }
 0x2c3   :  { %v1224_v26 = vadd.s32 %v1223_v25, %v1219_v15 }
 0x2c4   :  { %v1490_v16 = vand.u32 4294901760, %v1489_v2 }
 0x2c5   :  { %v1225_v27 = vadd.s32 536870912, %v1224_v26 }
 0x2c6   :  { %v1491_v21 = vsub.f32 %v1489_v2, %v1490_v16 }
 0x2c7   :  { %v1226_v28 = vshrl.u32 %v1225_v27, 30 }
 0x2c8   :  { %v1492_v25 = vand.u32 4294901760, %v1491_v21 }
 0x2c9   :  { %v1227_v31 = vshll.u32 %v1226_v28, 30  ;;  %v1250_v24 = vsub.s32 4, %v1226_v28 }
 0x2cb   :  { %v1228_v32 = vsub.s32 %v1224_v26, %v1227_v31  ;;  %v1251_v34 = vsel %vm1166_vm10, %v1250_v24, %v1226_v28 }
 0x2cc   :  { %v1253_v36 = vsel %vm1165_vm11, 0, %v1251_v34 }
 0x2cd   :  { %v1230_v38 = vsub.s32 0, %v1228_v32  ;;  %v1360_v37 = vadd.s32 3, %v1253_v36  ;;  %v1257_v41 = vand.u32 3, %v1253_v36 }
 0x2cf   :  { %v2399_v39 = vmin.u32 %v1230_v38, %v1228_v32  ;;  %v1361_v42 = vand.u32 3, %v1360_v37  ;;  %vm1262_vm12 = vcmp.eq.s32.totalorder %v1257_v41, 2  ;;  %vm1259_vm14 = vcmp.eq.s32.totalorder %v1257_v41, 0 }
 0x2d0   :  { %vm1258_vm1 = vcmp.lt.s32.totalorder %v1257_v41, 2 }
 0x2d1   :  { %v1232_v40 = vclz %v2399_v39  ;;  %vm1366_vm13 = vcmp.eq.s32.totalorder %v1361_v42, 2  ;;  %vm1363_vm15 = vcmp.eq.s32.totalorder %v1361_v42, 0  ;;  %vm1362_vm2 = vcmp.lt.s32.totalorder %v1361_v42, 2 }
 0x2d3   :  { %v2400_v47 = vadd.s32 4294967294, %v1232_v40  ;;  %v1398_v40 = vmul.u32 8, %v3411_v52  ;;  %v1870_v52 = vld [vmem:[%s3577_s1 + $0x98] sm:$0xff] }
 0x2d5   :  { %vm2401_vm9 = vcmp.lt.s32.totalorder %v2400_v47, 0 }
 0x2d6   :  { %v1235_v61 = vsel %vm2401_vm9, 0, %v2400_v47  ;;  %v1397_v47 = vand.u32 127, %v595_v51  ;;  %v1869_v51 = vld [vmem:[%s3577_s1 + $0x90] sm:$0xff]  ;;  %s3127_s1 = smov 116  }
 0x2d7   :  { %v1236_v5 = vsub.s32 32, %v1235_v61  ;;  %v1240_v6 = vsub.s32 4294967266, %v1235_v61  ;;  %v1237_v7 = vshll.u32 %v1228_v32, %v1235_v61  ;;  %v1400_v61 = vadd.s32 8, %v1398_v40 }
 0x2d8   :  { %vm1399_vm6 = vcmp.ge.s32.totalorder %v1397_v47, %v1398_v40 }
 0x2d9   :  { %v1238_v8 = vshrl.u32 %v1220_v3, %v1236_v5  ;;  %v1241_v9 = vadd.s32 127, %v1240_v6  ;;  %vm1401_vm7 = vcmp.lt.s32.totalorder %v1397_v47, %v1400_v61 }
 0x2da   :  { %vm1402_vm9 = vmand %vm1399_vm6, %vm1401_vm7 }
 0x2db   :  { %v1239_v10 = vor.u32 %v1238_v8, %v1237_v7  ;;  %v1242_v11 = vshll.u32 %v1241_v9, 23 }
 0x2dd   :  { %v1243_v12 = vor.u32 4788187, %v1242_v11  ;;  %v1246_v22 = vcvt.s32.f32 %v1239_v10 }
 0x2df   :  { %v1244_v18 = vand.u32 2147483647, %v1243_v12  ;;  %v1875_v12 = vand.u32 4294901760, %v1869_v51 }
 0x2e1   :  { %v1247_v23 = vmul.f32 %v1246_v22, %v1244_v18  ;;  %v1878_v18 = vand.u32 4294901760, %v1870_v52 }
 0x2e3   :  { %v1248_v29 = vxor.u32 2147483648, %v1247_v23  ;;  %v3025_v22 = vpack.c.bf16 %v1878_v18, %v1875_v12  ;;  %v1960_v24 = vsub.f32 %v1870_v52, %v1878_v18 }
 0x2e5   :  { %v1249_v30 = vsel %vm1166_vm10, %v1248_v29, %v1247_v23  ;;  %vm1406_vm10 = vcmask 130048   ;;  %v1953_v23 = vsub.f32 %v1869_v51, %v1875_v12  ;;  %3026 = vmatpush3.bf16.msra.mxu1 %v3025_v22 }
 0x2e6   :  { %v1252_v35 = vsel %vm1165_vm11, %v3489_v33, %v1249_v30  ;;  %v1405_v33 = vld [vmem:[%s3579_s2 + $0x8] sm:$0xff]  ;;  %s3125_s2 = smov 12   ;;  %v1961_v30 = vand.u32 4294901760, %v1960_v24  ;;  %3027 = vmatprep.subr.bf16.mxu1 %v3113_v0  ;;  %vm2388_vm11 = vcmask 7168  }
 0x2e7   :  { %3107 = vcosq.f32 %v1252_v35  ;;  %v1414_v63 = vand.u32 4294901760, %v1405_v33  ;;  %v1954_v29 = vand.u32 4294901760, %v1953_v23  ;;  %v3031_v42 = vpack.c.bf16 %v1960_v24, %v1953_v23 }
 0x2e8   :  { %3109 = vsinq.f32 %v1252_v35  ;;  %v1962_v35 = vsub.f32 %v1960_v24, %v1961_v30 }
 0x2e9   :  { %v3007_v1 = vpack.c.bf16 %v1414_v63, %v1411_v62  ;;  %v1496_v13 = vsub.f32 %v1405_v33, %v1414_v63  ;;  %v1955_v34 = vsub.f32 %v1953_v23, %v1954_v29 }
 0x2ea   :  { %v1963_v37 = vand.u32 4294901760, %v1962_v35 }
 0x2eb   :  { %3008 = vmatpush3.bf16.msra.mxu0 %v3007_v1  ;;  %v1497_v17 = vand.u32 4294901760, %v1496_v13  ;;  %v3013_v28 = vpack.c.bf16 %v1496_v13, %v1489_v2  ;;  %v1956_v36 = vand.u32 4294901760, %v1955_v34 }
 0x2ec   :  { %3009 = vmatprep.subr.bf16.mxu0 %v3113_v0 }
 0x2ed   :  { %v1498_v15 = vsub.f32 %v1496_v13, %v1497_v17  ;;  %v3019_v31 = vpack.c.bf16 %v1497_v17, %v1490_v16  ;;  %v3028_v41 = vpack.c.bf16 %v1963_v37, %v1956_v36 }
 0x2ef   :  { %v1499_v26 = vand.u32 4294901760, %v1498_v15 }
 0x2f1   :  { %v3108_v43 = vpop.eup %3107  ;;  %v3010_v27 = vpack.c.bf16 %v1499_v26, %v1492_v25 }
 0x2f2   :  { %v3110_v44 = vpop.eup %3109  ;;  %v1263_v45 = vxor.u32 2147483648, %v3108_v43 }
 0x2f3   :  { %v1260_v46 = vxor.u32 2147483648, %v3110_v44 }
 0x2f4   :  { %v1264_v48 = vsel %vm1262_vm12, %v1263_v45, %v3110_v44  ;;  %v1368_v54 = vsel %vm1366_vm13, %v1263_v45, %v3110_v44  ;;  %vm2390_vm12 = vcmask 9216  }
 0x2f5   :  { %v1261_v49 = vsel %vm1259_vm14, %v3108_v43, %v1260_v46  ;;  %v1365_v50 = vsel %vm1363_vm15, %v3108_v43, %v1260_v46  ;;  %v3037_v43 = vpack.c.bf16 %v1961_v30, %v1954_v29 }
 0x2f6   :  { %v1265_v53 = vsel %vm1258_vm1, %v1261_v49, %v1264_v48  ;;  %v1369_v55 = vsel %vm1362_vm2, %v1365_v50, %v1368_v54 }
 0x2f7   :  { %v3510_v56 = vsel %vm1256_vm3, nan, %v1265_v53  ;;  %v1370_v57 = vsel %vm1256_vm3, nan, %v1369_v55 }
 0x2f8   :  { %1383 = vrot.lane.b32.xlu0 %v3510_v56, %s3123_s27 }
 0x30c   :  { %v1374_v58 = vpop.permute.xlu1 %1373 }
 0x30d   :  { %v1377_v59 = vsel %vm1376_vm4, %v1374_v58, 0.0 }
 0x30e   :  { %1378 = vadd.xlane.f32.xlu1 %v1377_v59 }
 0x36a   :  { %v1384_v14 = vpop.permute.xlu0 %1383 }
 0x36b   :  { %v1387_v19 = vsel %vm1386_vm5, %v1384_v14, %v1370_v57 }
 0x36c   :  { %1389 = vrot.lane.b32.xlu0 %v1387_v19, %s3124_s4 }
 0x370   :  { %2348 = vrot.lane.b32.xlu0 %v1370_v57, %s3125_s2 }
 0x374   :  { %2335 = vrot.lane.b32.xlu0 %v1370_v57, %s3124_s4 }
 0x378   :  { %2344 = vrot.lane.b32.xlu0 %v3510_v56, %s3126_s5 }
 0x39b   :  { %v1379_v32 = vpop.xlane.xlu1 %1378 }
 0x39c   :  { %3111 = vrsqrt.f32 %v1379_v32 }
 0x3a6   :  { %v3112_v38 = vpop.eup %3111 }
 0x3a7   :  { %v3523_v39 = vmul.f32 %v3112_v38, %v3483_v20 }
 0x3a9   :  { %2358 = vrot.lane.b32.xlu0 %v3523_v39, %s3116_s26 }
 0x3de   :  { %v1390_v3 = vpop.permute.xlu0 %1389 }
 0x3df   :  { %v1393_v5 = vsel %vm1392_vm8, %v1387_v19, %v1390_v3 }
 0x3e0   :  { %v1403_v6 = vsel %vm1402_vm9, %v1393_v5, 0.0 }
 0x3e1   :  { %v1408_v7 = vsel %vm1406_vm10, %v1403_v6, 0 }
 0x3e2   :  { %v1477_v20 = vand.u32 4294901760, %v1408_v7  ;;  %v2349_v55 = vpop.permute.xlu0 %2348 }
 0x3e4   :  { %v1478_v8 = vsub.f32 %v1408_v7, %v1477_v20 }
 0x3e6   :  { %v1479_v9 = vand.u32 4294901760, %v1478_v8  ;;  %v2336_v60 = vpop.permute.xlu0 %2335 }
 0x3e8   :  { %v1480_v10 = vsub.f32 %v1478_v8, %v1479_v9 }
 0x3ea   :  { %v1481_v11 = vand.u32 4294901760, %v1480_v10  ;;  %v2345_v33 = vpop.permute.xlu0 %2344 }
 0x3ec   :  { %2783 = vmatmul.mubr.f32.vlgmr.msra.gmra.mrb[2].mxu0 %v1481_v11 }
 0x3ed   :  { %3011 = vmatpush3.bf16.msra.mxu0 %v3010_v27  ;;  %2789 = vmatprep.mubr.msk.f32.mxu0 %vm3114_vm0, %v3115_v4 }
 0x3ee   :  { %3012 = vmatprep.subr.bf16.mxu0 %v3113_v0 }
 0x3f4   :  { %2790 = vmatmul.mubr.f32.vlgmr.msra.gmra.mrb[2].mxu0 %v1477_v20 }
 0x3f5   :  { %3014 = vmatpush3.bf16.msra.mxu0 %v3013_v28  ;;  %2796 = vmatprep.mubr.msk.f32.mxu0 %vm3114_vm0, %v3115_v4 }
 0x3f6   :  { %3015 = vmatprep.subr.bf16.mxu0 %v3113_v0 }
 0x3fc   :  { %2797 = vmatmul.mubr.f32.vlgmr.msra.gmra.mrb[2].mxu0 %v1478_v8 }
 0x3fd   :  { %3017 = vmatpush3.bf16.msra.mxu0 %v3007_v1  ;;  %2803 = vmatprep.mubr.msk.f32.mxu0 %vm3114_vm0, %v3115_v4 }
 0x3fe   :  { %3018 = vmatprep.subr.bf16.mxu0 %v3113_v0 }
 0x404   :  { %2804 = vmatmul.mubr.f32.vlgmr.msra.gmra.mrb[2].mxu0 %v1479_v9 }
 0x405   :  { %3020 = vmatpush3.bf16.msra.mxu0 %v3019_v31  ;;  %2810 = vmatprep.mubr.msk.f32.mxu0 %vm3114_vm0, %v3115_v4 }
 0x406   :  { %3021 = vmatprep.subr.bf16.mxu0 %v3113_v0 }
 0x40c   :  { %2811 = vmatmul.mubr.f32.vlgmr.msra.gmra.mrb[2].mxu0 %v1477_v20 }
 0x40d   :  { %3023 = vmatpush3.bf16.msra.mxu0 %v3007_v1  ;;  %2817 = vmatprep.mubr.msk.f32.mxu0 %vm3114_vm0, %v3115_v4 }
 0x414   :  { %2818 = vmatmul.mubr.f32.vlgmr.msra.gmra.mrb[2].mxu0 %v1477_v20 }
 0x41b   :  { %v2359_v62 = vpop.permute.xlu0 %2358 }
 0x4e7   :  { %v1865_v44 = vpop.f32.mrb[2].mxu0 }
 0x4e8   :  { %v1872_v45 = vsel %vm1406_vm10, %v1865_v44, 0  ;;  %v2819_v46 = vpop.f32.mrb[3].mxu0 }
 0x4e9   :  { %v1941_v48 = vand.u32 4294901760, %v1872_v45 }
 0x4eb   :  { %v1942_v54 = vsub.f32 %v1872_v45, %v1941_v48 }
 0x4ed   :  { %v1943_v49 = vand.u32 4294901760, %v1942_v54 }
 0x4ef   :  { %v1944_v50 = vsub.f32 %v1942_v54, %v1943_v49 }
 0x4f1   :  { %v1945_v53 = vand.u32 4294901760, %v1944_v50 }
 0x4f3   :  { %2825 = vmatmul.mubr.f32.vlgmr.msra.gmra.mrb[2].mxu1 %v1945_v53 }
 0x4f4   :  { %3029 = vmatpush3.bf16.msra.mxu1 %v3028_v41  ;;  %2831 = vmatprep.mubr.msk.f32.mxu1 %vm3114_vm0, %v3115_v4 }
 0x4f5   :  { %3030 = vmatprep.subr.bf16.mxu1 %v3113_v0 }
 0x4fb   :  { %2832 = vmatmul.mubr.f32.vlgmr.msra.gmra.mrb[2].mxu1 %v1941_v48 }
 0x4fc   :  { %3032 = vmatpush3.bf16.msra.mxu1 %v3031_v42  ;;  %2838 = vmatprep.mubr.msk.f32.mxu1 %vm3114_vm0, %v3115_v4 }
 0x4fd   :  { %3033 = vmatprep.subr.bf16.mxu1 %v3113_v0 }
 0x503   :  { %2839 = vmatmul.mubr.f32.vlgmr.msra.gmra.mrb[2].mxu1 %v1942_v54 }
 0x504   :  { %3035 = vmatpush3.bf16.msra.mxu1 %v3025_v22  ;;  %2845 = vmatprep.mubr.msk.f32.mxu1 %vm3114_vm0, %v3115_v4 }
 0x505   :  { %3036 = vmatprep.subr.bf16.mxu1 %v3113_v0 }
 0x50b   :  { %2846 = vmatmul.mubr.f32.vlgmr.msra.gmra.mrb[2].mxu1 %v1943_v49 }
 0x50c   :  { %3038 = vmatpush3.bf16.msra.mxu1 %v3037_v43  ;;  %2852 = vmatprep.mubr.msk.f32.mxu1 %vm3114_vm0, %v3115_v4 }
 0x50d   :  { %3039 = vmatprep.subr.bf16.mxu1 %v3113_v0 }
 0x513   :  { %2853 = vmatmul.mubr.f32.vlgmr.msra.gmra.mrb[2].mxu1 %v1941_v48 }
 0x514   :  { %3041 = vmatpush3.bf16.msra.mxu1 %v3025_v22  ;;  %2859 = vmatprep.mubr.msk.f32.mxu1 %vm3114_vm0, %v3115_v4  ;;  %vm2368_vm0 = vcmask 25600  }
 0x51b   :  { %2860 = vmatmul.mubr.f32.vlgmr.msra.gmra.mrb[2].mxu1 %v1941_v48 }
 0x5ee   :  { %v2329_v57 = vpop.f32.mrb[2].mxu1 }
 0x5ef   :  { %v2861_v58 = vpop.f32.mrb[3].mxu1  ;;  %v2351_v59 = vmul.f32 %v2349_v55, %v2329_v57  ;;  %v2338_v0 = vmul.f32 %v2336_v60, %v2329_v57  ;;  %v2347_v4 = vmul.f32 %v2345_v33, %v2329_v57  ;;  %v2333_v17 = vmul.f32 %v2329_v57, %v3510_v56 }
 0x5f1   :  { %2353 = vrot.lane.b32.xlu0 %v2351_v59, %s3116_s26 }
 0x5f5   :  { %2376 = vrot.lane.b32.xlu0 %v3523_v39, %s3123_s27 }
 0x5f9   :  { %2372 = vrot.lane.b32.xlu0 %v3523_v39, %s3127_s1 }
 0x5fd   :  { %2340 = vrot.lane.b32.xlu0 %v2338_v0, %s3116_s26 }
 0x663   :  { %v2354_v63 = vpop.permute.xlu0 %2353 }
 0x664   :  { %v2356_v1 = vadd.f32 %v2354_v63, %v2347_v4 }
 0x666   :  { %v2362_v2 = vmul.f32 %v2359_v62, %v2356_v1 }
 0x667   :  { %v2377_v13 = vpop.permute.xlu0 %2376 }
 0x668   :  { %v2379_v14 = vmul.f32 %v2377_v13, %v2356_v1  ;;  %2364 = vrot.lane.b32.xlu0 %v2362_v2, %s3123_s27 }
 0x66a   :  { %2381 = vrot.lane.b32.xlu1 %v2379_v14, %s3123_s27 }
 0x66b   :  { %v2373_v16 = vpop.permute.xlu0 %2372 }
 0x66f   :  { %v2341_v19 = vpop.permute.xlu0 %2340 }
 0x670   :  { %v2343_v21 = vadd.f32 %v2341_v19, %v2333_v17 }
 0x672   :  { %v2361_v15 = vmul.f32 %v2359_v62, %v2343_v21  ;;  %v2375_v27 = vmul.f32 %v2373_v16, %v2343_v21 }
 0x6da   :  { %v2365_v25 = vpop.permute.xlu0 %2364 }
 0x6db   :  { %v2367_v26 = vsub.f32 %v2361_v15, %v2365_v25 }
 0x6dc   :  { %v2382_v28 = vpop.permute.xlu1 %2381 }
 0x6dd   :  { %v2384_v31 = vadd.f32 %v2382_v28, %v2375_v27  ;;  %v2369_v32 = vsel %vm2368_vm0, %v2367_v26, 0.0 }
 0x6de   :  { %2370 = vadd.xlane.f32.xlu0 %v2369_v32 }
 0x6df   :  { %v2385_v38 = vsel %vm2368_vm0, %v2384_v31, 0.0 }
 0x6e0   :  { %2386 = vadd.xlane.f32.xlu1 %v2385_v38 }
 0x76b   :  { %v2371_v39 = vpop.xlane.xlu0 %2370 }
 0x76d   :  { %v2387_v40 = vpop.xlane.xlu1 %2386 }
 0x76e   :  { %v2389_v47 = vsel %vm2388_vm11, %v2371_v39, %v2387_v40 }
 0x76f   :  { %2391 = vst.msk [vmem:[%s3580_s3] sm:$0x3] %vm2390_vm12, %v2389_v47 }

</bundles_post_ra>
